<compile_context>
chip_gen: v5e
topology: v5e:2x2
jax: 0.10.0
libtpu: 0.0.40
codegen_flags: <defaults>
</compile_context>

<pallas_src>
import numpy as np
import jax
import jax.numpy as jnp
from jax.experimental import pallas as pl
from jax.experimental.pallas import tpu as pltpu


# ---------------------------------------------------------------------------
# Kernel
# ---------------------------------------------------------------------------
def head_kernel(gcn_ref, negb_ref, we1_ref, we2_ref, bert_ref,
                w1t_ref, w1e1_ref, w1e2_ref, w1b_ref, b1_ref,
                w2_ref, b2_ref, out_ref):
    # (Bt, L, G) bf16 storage -> f32 compute (v5e VPU has no bf16 path).
    gcn = gcn_ref[...].astype(jnp.float32)
    negb = negb_ref[...]                         # (Bt, L) additive -1e12 at event positions
    we1 = we1_ref[...]                           # (Bt, L) keep1 / count1  (mean-pool weights)
    we2 = we2_ref[...]                           # (Bt, L) keep2 / count2

    # Pooling: reductions stay on axis=1 (sublane axis, XLU-served).
    tok = jnp.max(gcn + negb[:, :, None], axis=1)       # masked max pool   (Bt, G)
    e1 = jnp.sum(gcn * we1[:, :, None], axis=1)         # masked mean pool  (Bt, G)
    e2 = jnp.sum(gcn * we2[:, :, None], axis=1)         # masked mean pool  (Bt, G)
    bert = bert_ref[...].astype(jnp.float32)            # (Bt, 3*Bo)

    # Linear(D, 256) with BatchNorm1d(D) folded in; the feature-axis concatenate is
    # replaced by partial-dot accumulation in f32. Dropout (eval) = identity.
    h = (jnp.dot(tok, w1t_ref[...], preferred_element_type=jnp.float32)
         + jnp.dot(e1, w1e1_ref[...], preferred_element_type=jnp.float32)
         + jnp.dot(e2, w1e2_ref[...], preferred_element_type=jnp.float32)
         + jnp.dot(bert, w1b_ref[...], preferred_element_type=jnp.float32)
         + b1_ref[...])
    h = jnp.maximum(h, 0.0)                              # ReLU

    # Linear(256, 6) with BatchNorm1d(256) folded in, zero-padded to 128 output lanes
    # so the store is lane-dense (wrapper slices [:, :6]).
    out_ref[...] = (jnp.dot(h, w2_ref[...], preferred_element_type=jnp.float32)
                    + b2_ref[...])


# ---------------------------------------------------------------------------
# Host-side parameter construction (matches Head.__init__, BN folded, w2 padded)
# ---------------------------------------------------------------------------
def make_params(gcn_out_size: int, bert_out_size: int, key, out_pad: int = 128):
    G, Bo = gcn_out_size, bert_out_size
    D = 3 * G + 3 * Bo
    H, O = 256, 6
    eps = 1e-5
    k1, k2 = jax.random.split(key, 2)

    # BatchNorm1d eval: weight=1, bias=0, running_mean=0, running_var=1.
    bn1_scale = np.full((D,), 1.0 / np.sqrt(1.0 + eps), np.float32)
    bn1_bias = np.zeros((D,), np.float32)
    bn2_scale = np.full((H,), 1.0 / np.sqrt(1.0 + eps), np.float32)
    bn2_bias = np.zeros((H,), np.float32)

    # kaiming_normal_ (fan_in, gain sqrt(2)); bias = 0. Stored transposed (in, out).
    w1 = np.asarray(jax.random.normal(k1, (D, H), jnp.float32)) * np.float32(np.sqrt(2.0 / D))
    b1 = np.zeros((H,), np.float32)
    w2 = np.asarray(jax.random.normal(k2, (H, O), jnp.float32)) * np.float32(np.sqrt(2.0 / H))
    b2 = np.zeros((O,), np.float32)

    # Fold BN affines into the adjacent Linear: (x*s + c) @ W + b == x @ (s[:,None]*W) + (c @ W + b)
    w1f = w1 * bn1_scale[:, None]
    b1f = b1 + bn1_bias @ w1
    w2f = w2 * bn2_scale[:, None]
    b2f = b2 + bn2_bias @ w2

    # Split w1 by the concat segments [token | event1 | event2 | bert].
    w1_tok = jnp.asarray(w1f[0:G])
    w1_e1 = jnp.asarray(w1f[G:2 * G])
    w1_e2 = jnp.asarray(w1f[2 * G:3 * G])
    w1_bert = jnp.asarray(w1f[3 * G:])
    b1f = jnp.asarray(b1f.reshape(1, H))

    # Pad the 6-wide output Linear to 128 lanes for a lane-dense store.
    w2_pad = np.zeros((H, out_pad), np.float32)
    w2_pad[:, :O] = w2f
    b2_pad = np.zeros((1, out_pad), np.float32)
    b2_pad[0, :O] = b2f

    return (w1_tok, w1_e1, w1_e2, w1_bert, b1f,
            jnp.asarray(w2_pad), jnp.asarray(b2_pad))


# ---------------------------------------------------------------------------
# Host-side glue: ragged offset lists -> pooling auxiliaries (vectorized NumPy)
# ---------------------------------------------------------------------------
def build_pooling_aux(offsets_gcn: np.ndarray, seq_len: int):
    off = np.asarray(offsets_gcn)            # (B, 2, E), -1 padded
    B, _, E = off.shape
    keep1 = np.zeros((B, seq_len), np.float32)
    keep2 = np.zeros((B, seq_len), np.float32)
    rows = np.repeat(np.arange(B), E)
    e1 = off[:, 0, :].reshape(-1)
    e2 = off[:, 1, :].reshape(-1)
    v1 = e1 >= 0
    v2 = e2 >= 0
    keep1[rows[v1], e1[v1]] = 1.0            # 1.0 at event-1 positions
    keep2[rows[v2], e2[v2]] = 1.0            # 1.0 at event-2 positions

    event_any = np.maximum(keep1, keep2)     # token mask (any event position)
    neg_bias = event_any * np.float32(-1e12)  # additive bias for the masked max pool

    # Division folded into the per-position weights; guard empty event lists
    # (PyTorch would divide by zero here — guard keeps the matmul finite).
    cnt1 = np.maximum(keep1.sum(1, keepdims=True), 1.0)
    cnt2 = np.maximum(keep2.sum(1, keepdims=True), 1.0)
    return neg_bias, (keep1 / cnt1).astype(np.float32), (keep2 / cnt2).astype(np.float32)


# ---------------------------------------------------------------------------
# Wrapper: batch-tiled pallas_call
# ---------------------------------------------------------------------------
def head_forward(gcn_outputs, offsets_gcn, bert_embeddings, params,
                 *, max_batch_tile: int = 128, input_dtype=jnp.bfloat16):
    B, L, G = gcn_outputs.shape
    Bo3 = bert_embeddings.shape[1]
    (w1_tok, w1_e1, w1_e2, w1_bert, b1, w2_pad, b2_pad) = params
    H = w1_tok.shape[1]
    OUT_PAD = w2_pad.shape[1]

    negb, we1, we2 = build_pooling_aux(np.asarray(offsets_gcn), L)

    # Batch tiling: whole batch if small; otherwise 128-row tiles (multiple of 8,
    # sized well under the v7x 64 MiB VMEM for realistic L/G) with zero padding.
    Bt = B if B <= max_batch_tile else max_batch_tile
    B_pad = -(-B // Bt) * Bt

    def pad_b(x):
        if B_pad == B:
            return x
        pad = [(0, B_pad - B)] + [(0, 0)] * (x.ndim - 1)
        return jnp.pad(x, pad)

    gcn_in = pad_b(jnp.asarray(gcn_outputs).astype(input_dtype))
    bert_in = pad_b(jnp.asarray(bert_embeddings).astype(input_dtype))
    negb_in = pad_b(jnp.asarray(negb))
    we1_in = pad_b(jnp.asarray(we1))
    we2_in = pad_b(jnp.asarray(we2))

    out = pl.pallas_call(
        head_kernel,
        out_shape=jax.ShapeDtypeStruct((B_pad, OUT_PAD), jnp.float32),
        grid_spec=pltpu.PrefetchScalarGridSpec(
            num_scalar_prefetch=0,
            grid=(B_pad // Bt,),
            in_specs=[
                # per-sample inputs: tiled along batch
                pl.BlockSpec((Bt, L, G), lambda i: (i, 0, 0)),
                pl.BlockSpec((Bt, L), lambda i: (i, 0)),
                pl.BlockSpec((Bt, L), lambda i: (i, 0)),
                pl.BlockSpec((Bt, L), lambda i: (i, 0)),
                pl.BlockSpec((Bt, Bo3), lambda i: (i, 0)),
                # weights: constant index_map -> VMEM-resident across grid steps
                pl.BlockSpec((G, H), lambda i: (0, 0)),
                pl.BlockSpec((G, H), lambda i: (0, 0)),
                pl.BlockSpec((G, H), lambda i: (0, 0)),
                pl.BlockSpec((Bo3, H), lambda i: (0, 0)),
                pl.BlockSpec((1, H), lambda i: (0, 0)),
                pl.BlockSpec((H, OUT_PAD), lambda i: (0, 0)),
                pl.BlockSpec((1, OUT_PAD), lambda i: (0, 0)),
            ],
            out_specs=pl.BlockSpec((Bt, OUT_PAD), lambda i: (i, 0)),
        ),
        compiler_params=pltpu.CompilerParams(
            dimension_semantics=("parallel",)),
    )(gcn_in, negb_in, we1_in, we2_in, bert_in,
      w1_tok, w1_e1, w1_e2, w1_bert, b1, w2_pad, b2_pad)

    return out[:B, :6]


if __name__ == "__main__":
    # Small shapes consistent with the module.
    B, L = 4, 16
    gcn_out_size = 32
    bert_out_size = 32

    key = jax.random.PRNGKey(0)
    k_gcn, k_bert, k_param = jax.random.split(key, 3)

    gcn_outputs = jax.random.normal(k_gcn, (B, L, gcn_out_size), jnp.float32)
    bert_embeddings = jax.random.normal(
        k_bert, (B, 3 * bert_out_size), jnp.float32)

    # offsets_gcn: (B, 2, max_events) with -1 padding; deterministic, at least
    # one valid position per event so the mean-pool denominators are nonzero.
    offsets_gcn = np.full((B, 2, 2), -1, np.int32)
    for b in range(B):
        offsets_gcn[b, 0, 0] = b % L                    # event1 positions
        offsets_gcn[b, 0, 1] = (b + 1) % L
        offsets_gcn[b, 1, 0] = (b + 5) % L              # event2 positions
        if b % 2 == 0:
            offsets_gcn[b, 1, 1] = (b + 7) % L

    params = make_params(gcn_out_size, bert_out_size, k_param)

    out = head_forward(gcn_outputs, offsets_gcn, bert_embeddings, params)
    out = jax.block_until_ready(out)
    assert out.shape == (B, 6) and out.dtype == jnp.float32
    assert bool(jnp.all(jnp.isfinite(out)))
    print("KERNEL_OK")
</pallas_src>

<mosaic_0001>
module attributes {stable_mosaic.version = 11 : i64} {
  func.func @head_kernel(%arg0: i32, %arg1: memref<4x16x32xbf16, #tpu.memory_space<vmem>>, %arg2: memref<4x16xf32, #tpu.memory_space<vmem>>, %arg3: memref<4x16xf32, #tpu.memory_space<vmem>>, %arg4: memref<4x16xf32, #tpu.memory_space<vmem>>, %arg5: memref<4x96xbf16, #tpu.memory_space<vmem>>, %arg6: memref<32x256xf32, #tpu.memory_space<vmem>>, %arg7: memref<32x256xf32, #tpu.memory_space<vmem>>, %arg8: memref<32x256xf32, #tpu.memory_space<vmem>>, %arg9: memref<96x256xf32, #tpu.memory_space<vmem>>, %arg10: memref<1x256xf32, #tpu.memory_space<vmem>>, %arg11: memref<256x128xf32, #tpu.memory_space<vmem>>, %arg12: memref<1x128xf32, #tpu.memory_space<vmem>>, %arg13: memref<4x128xf32, #tpu.memory_space<vmem>>) attributes {dimension_semantics = [#tpu.dimension_semantics<parallel>], iteration_bounds = array<i64: 1>, scalar_prefetch = 0 : i64, scratch_operands = 0 : i64, tpu.core_type = #tpu.core_type<tc>, window_params = [{transform_indices = @transform_0, window_bounds = array<i64: 4, 16, 32>}, {transform_indices = @transform_1, window_bounds = array<i64: 4, 16>}, {transform_indices = @transform_2, window_bounds = array<i64: 4, 16>}, {transform_indices = @transform_3, window_bounds = array<i64: 4, 16>}, {transform_indices = @transform_4, window_bounds = array<i64: 4, 96>}, {pipeline_mode = #tpu.pipeline_mode<synchronous>, transform_indices = @transform_5, window_bounds = array<i64: 32, 256>}, {pipeline_mode = #tpu.pipeline_mode<synchronous>, transform_indices = @transform_6, window_bounds = array<i64: 32, 256>}, {pipeline_mode = #tpu.pipeline_mode<synchronous>, transform_indices = @transform_7, window_bounds = array<i64: 32, 256>}, {pipeline_mode = #tpu.pipeline_mode<synchronous>, transform_indices = @transform_8, window_bounds = array<i64: 96, 256>}, {pipeline_mode = #tpu.pipeline_mode<synchronous>, transform_indices = @transform_9, window_bounds = array<i64: 1, 256>}, {pipeline_mode = #tpu.pipeline_mode<synchronous>, transform_indices = @transform_10, window_bounds = array<i64: 256, 128>}, {pipeline_mode = #tpu.pipeline_mode<synchronous>, transform_indices = @transform_11, window_bounds = array<i64: 1, 128>}, {transform_indices = @transform_12, window_bounds = array<i64: 4, 128>}]} {
    %c0 = arith.constant 0 : index
    %c0_0 = arith.constant 0 : index
    %c0_1 = arith.constant 0 : index
    %0 = vector.load %arg1[%c0, %c0_0, %c0_1] : memref<4x16x32xbf16, #tpu.memory_space<vmem>>, vector<4x16x32xbf16>
    %1 = arith.extf %0 : vector<4x16x32xbf16> to vector<4x16x32xf32>
    %c0_2 = arith.constant 0 : index
    %c0_3 = arith.constant 0 : index
    %2 = vector.load %arg2[%c0_2, %c0_3] : memref<4x16xf32, #tpu.memory_space<vmem>>, vector<4x16xf32>
    %c0_4 = arith.constant 0 : index
    %c0_5 = arith.constant 0 : index
    %3 = vector.load %arg3[%c0_4, %c0_5] : memref<4x16xf32, #tpu.memory_space<vmem>>, vector<4x16xf32>
    %c0_6 = arith.constant 0 : index
    %c0_7 = arith.constant 0 : index
    %4 = vector.load %arg4[%c0_6, %c0_7] : memref<4x16xf32, #tpu.memory_space<vmem>>, vector<4x16xf32>
    %5 = vector.shape_cast %2 : vector<4x16xf32> to vector<4x16x1xf32>
    %6 = vector.broadcast %5 : vector<4x16x1xf32> to vector<4x16x32xf32>
    %7 = arith.addf %1, %6 : vector<4x16x32xf32>
    %cst = arith.constant dense<0xFF800000> : vector<4x32xf32>
    %8 = vector.multi_reduction <maximumf>, %7, %cst [1] : vector<4x16x32xf32> to vector<4x32xf32>
    %9 = vector.shape_cast %3 : vector<4x16xf32> to vector<4x16x1xf32>
    %10 = vector.broadcast %9 : vector<4x16x1xf32> to vector<4x16x32xf32>
    %11 = arith.mulf %1, %10 : vector<4x16x32xf32>
    %cst_8 = arith.constant dense<0.000000e+00> : vector<4x32xf32>
    %12 = vector.multi_reduction <add>, %11, %cst_8 [1] : vector<4x16x32xf32> to vector<4x32xf32>
    %13 = vector.shape_cast %4 : vector<4x16xf32> to vector<4x16x1xf32>
    %14 = vector.broadcast %13 : vector<4x16x1xf32> to vector<4x16x32xf32>
    %15 = arith.mulf %1, %14 : vector<4x16x32xf32>
    %cst_9 = arith.constant dense<0.000000e+00> : vector<4x32xf32>
    %16 = vector.multi_reduction <add>, %15, %cst_9 [1] : vector<4x16x32xf32> to vector<4x32xf32>
    %c0_10 = arith.constant 0 : index
    %c0_11 = arith.constant 0 : index
    %17 = vector.load %arg5[%c0_10, %c0_11] : memref<4x96xbf16, #tpu.memory_space<vmem>>, vector<4x96xbf16>
    %18 = arith.extf %17 : vector<4x96xbf16> to vector<4x96xf32>
    %c0_12 = arith.constant 0 : index
    %c0_13 = arith.constant 0 : index
    %19 = vector.load %arg6[%c0_12, %c0_13] : memref<32x256xf32, #tpu.memory_space<vmem>>, vector<32x256xf32>
    %cst_14 = arith.constant dense<0.000000e+00> : vector<4x256xf32>
    %20 = tpu.matmul %8, %19, %cst_14 {dimension_numbers = #tpu.dot_dimension_numbers<[1], [0], [0], [1], [0, 0, 1, 1], [], []>} : vector<4x32xf32>, vector<32x256xf32>, vector<4x256xf32> -> vector<4x256xf32>
    %c0_15 = arith.constant 0 : index
    %c0_16 = arith.constant 0 : index
    %21 = vector.load %arg7[%c0_15, %c0_16] : memref<32x256xf32, #tpu.memory_space<vmem>>, vector<32x256xf32>
    %cst_17 = arith.constant dense<0.000000e+00> : vector<4x256xf32>
    %22 = tpu.matmul %12, %21, %cst_17 {dimension_numbers = #tpu.dot_dimension_numbers<[1], [0], [0], [1], [0, 0, 1, 1], [], []>} : vector<4x32xf32>, vector<32x256xf32>, vector<4x256xf32> -> vector<4x256xf32>
    %23 = arith.addf %20, %22 : vector<4x256xf32>
    %c0_18 = arith.constant 0 : index
    %c0_19 = arith.constant 0 : index
    %24 = vector.load %arg8[%c0_18, %c0_19] : memref<32x256xf32, #tpu.memory_space<vmem>>, vector<32x256xf32>
    %cst_20 = arith.constant dense<0.000000e+00> : vector<4x256xf32>
    %25 = tpu.matmul %16, %24, %cst_20 {dimension_numbers = #tpu.dot_dimension_numbers<[1], [0], [0], [1], [0, 0, 1, 1], [], []>} : vector<4x32xf32>, vector<32x256xf32>, vector<4x256xf32> -> vector<4x256xf32>
    %26 = arith.addf %23, %25 : vector<4x256xf32>
    %c0_21 = arith.constant 0 : index
    %c0_22 = arith.constant 0 : index
    %27 = vector.load %arg9[%c0_21, %c0_22] : memref<96x256xf32, #tpu.memory_space<vmem>>, vector<96x256xf32>
    %cst_23 = arith.constant dense<0.000000e+00> : vector<4x256xf32>
    %28 = tpu.matmul %18, %27, %cst_23 {dimension_numbers = #tpu.dot_dimension_numbers<[1], [0], [0], [1], [0, 0, 1, 1], [], []>} : vector<4x96xf32>, vector<96x256xf32>, vector<4x256xf32> -> vector<4x256xf32>
    %29 = arith.addf %26, %28 : vector<4x256xf32>
    %c0_24 = arith.constant 0 : index
    %c0_25 = arith.constant 0 : index
    %30 = vector.load %arg10[%c0_24, %c0_25] : memref<1x256xf32, #tpu.memory_space<vmem>>, vector<1x256xf32>
    %31 = vector.broadcast %30 : vector<1x256xf32> to vector<4x256xf32>
    %32 = arith.addf %29, %31 : vector<4x256xf32>
    %cst_26 = arith.constant 0.000000e+00 : f32
    %33 = vector.broadcast %cst_26 : f32 to vector<4x256xf32>
    %34 = arith.maximumf %32, %33 : vector<4x256xf32>
    %c0_27 = arith.constant 0 : index
    %c0_28 = arith.constant 0 : index
    %35 = vector.load %arg11[%c0_27, %c0_28] : memref<256x128xf32, #tpu.memory_space<vmem>>, vector<256x128xf32>
    %cst_29 = arith.constant dense<0.000000e+00> : vector<4x128xf32>
    %36 = tpu.matmul %34, %35, %cst_29 {dimension_numbers = #tpu.dot_dimension_numbers<[1], [0], [0], [1], [0, 0, 1, 1], [], []>} : vector<4x256xf32>, vector<256x128xf32>, vector<4x128xf32> -> vector<4x128xf32>
    %c0_30 = arith.constant 0 : index
    %c0_31 = arith.constant 0 : index
    %37 = vector.load %arg12[%c0_30, %c0_31] : memref<1x128xf32, #tpu.memory_space<vmem>>, vector<1x128xf32>
    %38 = vector.broadcast %37 : vector<1x128xf32> to vector<4x128xf32>
    %39 = arith.addf %36, %38 : vector<4x128xf32>
    %c0_32 = arith.constant 0 : index
    %c0_33 = arith.constant 0 : index
    %40 = vector.load %arg13[%c0_32, %c0_33] : memref<4x128xf32, #tpu.memory_space<vmem>>, vector<4x128xf32>
    tpu.vector_store %arg13[%c0_32, %c0_33], %39 {strides = array<i32>} : memref<4x128xf32, #tpu.memory_space<vmem>>, vector<4x128xf32>,
    return
  }
  func.func @transform_0(%arg0: i32) -> (i32, i32, i32) {
    %c0_i32 = arith.constant 0 : i32
    %c0_i32_0 = arith.constant 0 : i32
    %c0_i32_1 = arith.constant 0 : i32
    return %arg0, %c0_i32, %c0_i32_0 : i32, i32, i32
  }
  func.func @transform_1(%arg0: i32) -> (i32, i32) {
    %c0_i32 = arith.constant 0 : i32
    %c0_i32_0 = arith.constant 0 : i32
    return %arg0, %c0_i32 : i32, i32
  }
  func.func @transform_2(%arg0: i32) -> (i32, i32) {
    %c0_i32 = arith.constant 0 : i32
    %c0_i32_0 = arith.constant 0 : i32
    return %arg0, %c0_i32 : i32, i32
  }
  func.func @transform_3(%arg0: i32) -> (i32, i32) {
    %c0_i32 = arith.constant 0 : i32
    %c0_i32_0 = arith.constant 0 : i32
    return %arg0, %c0_i32 : i32, i32
  }
  func.func @transform_4(%arg0: i32) -> (i32, i32) {
    %c0_i32 = arith.constant 0 : i32
    %c0_i32_0 = arith.constant 0 : i32
    return %arg0, %c0_i32 : i32, i32
  }
  func.func @transform_5(%arg0: i32) -> (i32, i32) {
    %c0_i32 = arith.constant 0 : i32
    %c0_i32_0 = arith.constant 0 : i32
    %c0_i32_1 = arith.constant 0 : i32
    return %c0_i32, %c0_i32_0 : i32, i32
  }
  func.func @transform_6(%arg0: i32) -> (i32, i32) {
    %c0_i32 = arith.constant 0 : i32
    %c0_i32_0 = arith.constant 0 : i32
    %c0_i32_1 = arith.constant 0 : i32
    return %c0_i32, %c0_i32_0 : i32, i32
  }
  func.func @transform_7(%arg0: i32) -> (i32, i32) {
    %c0_i32 = arith.constant 0 : i32
    %c0_i32_0 = arith.constant 0 : i32
    %c0_i32_1 = arith.constant 0 : i32
    return %c0_i32, %c0_i32_0 : i32, i32
  }
  func.func @transform_8(%arg0: i32) -> (i32, i32) {
    %c0_i32 = arith.constant 0 : i32
    %c0_i32_0 = arith.constant 0 : i32
    %c0_i32_1 = arith.constant 0 : i32
    return %c0_i32, %c0_i32_0 : i32, i32
  }
  func.func @transform_9(%arg0: i32) -> (i32, i32) {
    %c0_i32 = arith.constant 0 : i32
    %c0_i32_0 = arith.constant 0 : i32
    %c0_i32_1 = arith.constant 0 : i32
    return %c0_i32, %c0_i32_0 : i32, i32
  }
  func.func @transform_10(%arg0: i32) -> (i32, i32) {
    %c0_i32 = arith.constant 0 : i32
    %c0_i32_0 = arith.constant 0 : i32
    %c0_i32_1 = arith.constant 0 : i32
    return %c0_i32, %c0_i32_0 : i32, i32
  }
  func.func @transform_11(%arg0: i32) -> (i32, i32) {
    %c0_i32 = arith.constant 0 : i32
    %c0_i32_0 = arith.constant 0 : i32
    %c0_i32_1 = arith.constant 0 : i32
    return %c0_i32, %c0_i32_0 : i32, i32
  }
  func.func @transform_12(%arg0: i32) -> (i32, i32) {
    %c0_i32 = arith.constant 0 : i32
    %c0_i32_0 = arith.constant 0 : i32
    return %arg0, %c0_i32 : i32, i32
  }
}

</mosaic_0001>

<bundles_post_ra>
// kernel: tpu_custom_call.1
= control target key start
LH: loop header
LB: loop body
LE: loop exit
PB: predicated region body
PF: predicated region fallthrough
CT: control target
= control target key end

     0   :  { %17 = vsyncpa [#allocation3], 0  ;;  %s1377_s0 = inlined_call_operand.hbm [shape: bf16[4,16,32], index: 0, kind: input, shape index: {}]   ;;  %s1378_s1 = inlined_call_operand.hbm [shape: f32[4,16], index: 1, kind: input, shape index: {}]   ;;  %s1379_s2 = inlined_call_operand.hbm [shape: f32[4,16], index: 2, kind: input, shape index: {}]   ;;  %s1380_s3 = inlined_call_operand.hbm [shape: f32[4,16], index: 3, kind: input, shape index: {}]   ;;  %s1381_s4 = inlined_call_operand.vmem [shape: bf16[4,96], index: 4, kind: input, shape index: {}]   ;;  %s1382_s5 = inlined_call_operand.hbm [shape: f32[32,256], index: 5, kind: input, shape index: {}]   ;;  %s1383_s6 = inlined_call_operand.hbm [shape: f32[32,256], index: 6, kind: input, shape index: {}]   ;;  %s1384_s7 = inlined_call_operand.hbm [shape: f32[32,256], index: 7, kind: input, shape index: {}]   ;;  %s1385_s8 = inlined_call_operand.hbm [shape: f32[96,256], index: 8, kind: input, shape index: {}]   ;;  %s1386_s9 = inlined_call_operand.vmem [shape: f32[1,256], index: 9, kind: input, shape index: {}]   ;;  %s1387_s10 = inlined_call_operand.hbm [shape: f32[256,128], index: 10, kind: input, shape index: {}]   ;;  %s1388_s11 = inlined_call_operand.vmem [shape: f32[1,128], index: 11, kind: input, shape index: {}]   ;;  %s1389_s12 = inlined_call_operand.hbm [shape: f32[4,128], index: 12, kind: output, shape index: {}]  }
   0x1   :  { %18 = vsyncpa [#allocation6], 0 }
   0x2   :  { %19 = vsyncpa [#allocation9], 0 }
   0x3   :  { %20 = vsyncpa [#allocation12], 0 }
   0x4   :  { %21 = vsyncpa [#allocation15], 0  ;;  %s41_s23 = sshll.u32 %s1378_s1, 4  ;;  %s42_s23 = int_to_ptr.hbm [resolvable:$true] %s41_s23 }
   0x5   :  { %22 = vsyncpa [#allocation4], 0  ;;  %s1150_s24 = smov [#allocation5]   ;;  %s63_s28 = sshll.u32 %s1380_s3, 4  ;;  %s64_s28 = int_to_ptr.hbm [resolvable:$true] %s63_s28 }
   0x6   :  { %s43_s25 = sshll.u32 %s1150_s24, 4  ;;  %s1151_s29 = smov [#allocation8]   ;;  %s44_s25 = int_to_ptr.vmem [resolvable:$true] %s43_s25 }
   0x7   :  { %46 = dma.hbm_to_vmem [thread:$0]  %s42_s23, 64, %s44_s25, [#allocation6]  }
   0x8   :  { %s65_s30 = sshll.u32 %s1151_s29, 4  ;;  %s88_s15 = sshll.u32 %s1383_s6, 4  ;;  %s66_s30 = int_to_ptr.vmem [resolvable:$true] %s65_s30  ;;  %s89_s15 = int_to_ptr.hbm [resolvable:$true] %s88_s15 }
   0x9   :  { %68 = dma.hbm_to_vmem [thread:$0]  %s64_s28, 64, %s66_s30, [#allocation9]  }
   0xa   :  { %s1152_s1 = smov [#allocation11]   ;;  %s114_s19 = sshll.u32 %s1385_s8, 4  ;;  %s115_s19 = int_to_ptr.hbm [resolvable:$true] %s114_s19 }
   0xb   :  { %s90_s16 = sshll.u32 %s1152_s1, 4  ;;  %s1153_s20 = smov 256   ;;  %s91_s16 = int_to_ptr.vmem [resolvable:$true] %s90_s16 }
   0xc   :  { %s1154_s3 = smov 16   ;;  %s1155_s21 = smov [#allocation14]  }
   0xd   :  { %96 = dma.hbm_to_vmem [thread:$0]  %s89_s15, 1024, %s91_s16, [#allocation12], %s1153_s20, %s1153_s20, %s1154_s3  }
   0xe   :  { %s116_s22 = sshll.u32 %s1155_s21, 4  ;;  %s27_s6 = sshll.u32 %s1377_s0, 4  ;;  %s117_s22 = int_to_ptr.vmem [resolvable:$true] %s116_s22  ;;  %s28_s6 = int_to_ptr.hbm [resolvable:$true] %s27_s6 }
   0xf   :  { %122 = dma.hbm_to_vmem [thread:$0]  %s115_s19, 3072, %s117_s22, [#allocation15], %s1153_s20, %s1153_s20, %s1154_s3  }
  0x10   :  { %s1156_s8 = smov [#allocation2]   ;;  %s52_s28 = sshll.u32 %s1379_s2, 4  ;;  %s53_s28 = int_to_ptr.hbm [resolvable:$true] %s52_s28 }
  0x11   :  { %s29_s25 = sshll.u32 %s1156_s8, 4  ;;  %s1157_s29 = smov 64   ;;  %s30_s25 = int_to_ptr.vmem [resolvable:$true] %s29_s25 }
  0x12   :  { %s1158_s30 = smov 4   ;;  %s1159_s13 = smov [#allocation7]  }
  0x13   :  { %35 = dma.hbm_to_vmem [thread:$0]  %s28_s6, 512, %s30_s25, [#allocation3], %s1157_s29, %s1157_s29, %s1158_s30  }
  0x14   :  { %s54_s14 = sshll.u32 %s1159_s13, 4  ;;  %s75_s1 = sshll.u32 %s1382_s5, 4  ;;  %s55_s14 = int_to_ptr.vmem [resolvable:$true] %s54_s14  ;;  %s76_s1 = int_to_ptr.hbm [resolvable:$true] %s75_s1 }
  0x15   :  { %57 = dma.hbm_to_vmem [thread:$0]  %s53_s28, 64, %s55_s14, [#allocation6]  }
  0x16   :  { %s101_s18 = sshll.u32 %s1384_s7, 4  ;;  %s1160_s19 = smov [#allocation10]   ;;  %s102_s18 = int_to_ptr.hbm [resolvable:$true] %s101_s18 }
  0x17   :  { %s77_s21 = sshll.u32 %s1160_s19, 4  ;;  %s1161_s2 = smov [#allocation13]   ;;  %s78_s21 = int_to_ptr.vmem [resolvable:$true] %s77_s21 }
  0x18   :  { %83 = dma.hbm_to_vmem [thread:$0]  %s76_s1, 1024, %s78_s21, [#allocation9], %s1153_s20, %s1153_s20, %s1154_s3  }
  0x19   :  { %s103_s22 = sshll.u32 %s1161_s2, 4  ;;  %s129_s5 = sshll.u32 %s1387_s10, 4  ;;  %s104_s22 = int_to_ptr.vmem [resolvable:$true] %s103_s22  ;;  %s130_s5 = int_to_ptr.hbm [resolvable:$true] %s129_s5 }
  0x1a   :  { %109 = dma.hbm_to_vmem [thread:$0]  %s102_s18, 1024, %s104_s22, [#allocation12], %s1153_s20, %s1153_s20, %s1154_s3  }
  0x1b   :  { %s1162_s7 = smov [#allocation16]   ;;  %s1163_s8 = smov 128  }
  0x1c   :  { %s131_s6 = sshll.u32 %s1162_s7, 4  ;;  %s1164_s25 = smov 8   ;;  %s132_s6 = int_to_ptr.vmem [resolvable:$true] %s131_s6 }
  0x1d   :  { %137 = dma.hbm_to_vmem [thread:$0]  %s130_s5, 4096, %s132_s6, [#allocation15], %s1163_s8, %s1163_s8, %s1164_s25  }
  0x1e   :  { %1138 = dma.done.wait [#allocation3], 512  }
  0x1f   :  { %1139 = vsyncadd [#allocation3], 4294966784 }
  0x20   :  { %1140 = dma.done.wait [#allocation6], 128  }
  0x21   :  { %1141 = vsyncadd [#allocation6], 4294967168 }
  0x22   :  { %1142 = dma.done.wait [#allocation9], 1088  }
  0x23   :  { %1143 = vsyncadd [#allocation9], 4294966208 }
  0x24   :  { %1144 = dma.done.wait [#allocation12], 2048  }
  0x25   :  { %1145 = vsyncadd [#allocation12], 4294965248 }
  0x26   :  { %1146 = dma.done.wait [#allocation15], 7168  }
  0x27   :  { %1147 = vsyncadd [#allocation15], 4294960128  ;;  %v196_v0 = vlaneseq  ;;  %v193_v3 = vld [vmem:[#allocation7] sm:$0xf]  ;;  %v192_v7 = vld [vmem:[#allocation5] sm:$0xf] }
  0x28   :  { %v305_v4 = vperm.slane %v193_v3, 1  ;;  %v318_v5 = vperm.slane %v193_v3, 2  ;;  %v292_v6 = vperm.slane %v193_v3, 0  ;;  %v221_v8 = vperm.slane %v192_v7, 2  ;;  %v194_v12 = vld [vmem:[#allocation8] sm:$0xf] }
  0x29   :  { %v197_v1 = vshrl.u32 %v196_v0, 7  ;;  %v331_v9 = vperm.slane %v193_v3, 3  ;;  %v195_v10 = vperm.slane %v192_v7, 0  ;;  %v208_v11 = vperm.slane %v192_v7, 1  ;;  %v864_v21 = vld [vmem:[#allocation2 + $0x8] sm:$0xff]   ;;  %v865_v22 = vld [vmem:[#allocation2 + $0x10] sm:$0xff]  }
  0x2a   :  { %v401_v13 = vperm.slane %v194_v12, 1  ;;  %v427_v14 = vperm.slane %v194_v12, 3  ;;  %v234_v15 = vperm.slane %v192_v7, 3  ;;  %v388_v16 = vperm.slane %v194_v12, 0  ;;  %v500_v24 = vld [vmem:[#allocation11 + $0x30] sm:$0xff]  ;;  %v501_v25 = vld [vmem:[#allocation11 + $0x38] sm:$0xff] }
  0x2b   :  { %884 = vset.pattern.permute.xlu1 %v197_v1  ;;  %v204_v2 = vadd.s32 8, %v197_v1  ;;  %885 = vset.pattern.permute.xlu2 %v197_v1  ;;  %v414_v17 = vperm.slane %v194_v12, 2  ;;  %v1270_v23 = vunpack.c.l.bf16 %v864_v21  ;;  %v1272_v26 = vunpack.c.l.bf16 %v865_v22  ;;  %v498_v29 = vld [vmem:[#allocation11 + $0x20] sm:$0xff]  ;;  %v499_v30 = vld [vmem:[#allocation11 + $0x28] sm:$0xff]  ;;  %v496_v32 = vld [vmem:[#allocation11 + $0x10] sm:$0xff]  ;;  %s1165_s27 = smov [#allocation17]  }
  0x2c   :  { %v1274_v28 = vunpack.c.h.bf16 %v865_v22  ;;  %526 = vmatpush.msra.mxu2 %v500_v24  ;;  %546 = vmatpush.msra.mxu3 %v501_v25  ;;  %v1276_v31 = vunpack.c.h.bf16 %v864_v21  ;;  %v497_v33 = vld [vmem:[#allocation11 + $0x18] sm:$0xff]  ;;  %vm255_vm0 = vcmask 261120   ;;  %v494_v41 = vld [vmem:[#allocation11] sm:$0xff]  ;;  %v495_v42 = vld [vmem:[#allocation11 + $0x8] sm:$0xff]  ;;  %vm506_vm1 = vcmask 1041409   ;;  %s824_s28 = sshll.u32 %s1165_s27, 4  ;;  %s825_s28 = int_to_ptr.vmem [resolvable:$true] %s824_s28 }
  0x2d   :  { %883 = vset.pattern.permute.xlu0 %v204_v2  ;;  %v849_v37 = vld [vmem:[#allocation2] sm:$0xff]   ;;  %v866_v54 = vld [vmem:[#allocation2 + $0x18] sm:$0xff]   ;;  %vm508_vm2 = vcmask 1042434   ;;  %vm510_vm3 = vcmask 1043459   ;;  %vm686_vm4 = vcmask 785408   ;;  %s826_s13 = sshll.u32 %s1389_s12, 4  ;;  %s827_s13 = int_to_ptr.hbm [resolvable:$true] %s826_s13 }
  0x2e   :  { %527 = vmatpush.msra.mxu2 %v498_v29  ;;  %547 = vmatpush.msra.mxu3 %v499_v30  ;;  %v1285_v44 = vunpack.c.h.bf16 %v849_v37  ;;  %v1291_v52 = vunpack.c.l.bf16 %v849_v37  ;;  %v1294_v58 = vunpack.c.h.bf16 %v866_v54  ;;  %v1298_v63 = vunpack.c.l.bf16 %v866_v54 }
  0x30   :  { %528 = vmatpush.msra.mxu2 %v496_v32  ;;  %548 = vmatpush.msra.mxu3 %v497_v33 }
  0x32   :  { %529 = vmatpush.msra.mxu2 %v494_v41  ;;  %549 = vmatpush.msra.mxu3 %v495_v42  ;;  %v493_v41 = vld [vmem:[#allocation10 + $0x38] sm:$0xff] }
  0x33   :  { %310 = vperm.xlu1 %884, %v305_v4   ;;  %323 = vperm.xlu2 %885, %v318_v5  }
  0x34   :  { %595 = vmatpush.msrb.mxu3 %v493_v41 }
  0x35   :  { %303 = vperm.xlu0 %883, %v292_v6  }
  0x3b   :  { %886 = vset.pattern.permute.xlu1 %v204_v2  ;;  %888 = vset.pattern.permute.xlu2 %v204_v2 }
  0x3d   :  { %232 = vperm.xlu0 %883, %v221_v8  }
  0x43   :  { %316 = vperm.xlu1 %886, %v305_v4   ;;  %329 = vperm.xlu2 %888, %v318_v5  }
  0x45   :  { %891 = vset.pattern.permute.xlu0 %v197_v1 }
  0x4b   :  { %887 = vset.pattern.permute.xlu1 %v197_v1  ;;  %342 = vperm.xlu2 %888, %v331_v9  }
  0x4d   :  { %297 = vperm.xlu0 %891, %v292_v6  }
  0x53   :  { %336 = vperm.xlu1 %887, %v331_v9   ;;  %890 = vset.pattern.permute.xlu2 %v197_v1 }
  0x55   :  { %200 = vperm.xlu0 %891, %v195_v10  }
  0x5b   :  { %889 = vset.pattern.permute.xlu1 %v204_v2  ;;  %213 = vperm.xlu2 %890, %v208_v11  }
  0x5d   :  { %406 = vperm.xlu0 %891, %v401_v13  }
  0x63   :  { %206 = vperm.xlu1 %889, %v195_v10   ;;  %226 = vperm.xlu2 %890, %v221_v8  }
  0x65   :  { %896 = vset.pattern.permute.xlu0 %v204_v2 }
  0x6b   :  { %219 = vperm.xlu1 %889, %v208_v11   ;;  %893 = vset.pattern.permute.xlu2 %v204_v2 }
  0x6d   :  { %438 = vperm.xlu0 %896, %v427_v14  }
  0x73   :  { %892 = vset.pattern.permute.xlu1 %v197_v1  ;;  %245 = vperm.xlu2 %893, %v234_v15  }
  0x7b   :  { %239 = vperm.xlu1 %892, %v234_v15   ;;  %399 = vperm.xlu2 %893, %v388_v16  }
  0x83   :  { %393 = vperm.xlu1 %892, %v388_v16   ;;  %895 = vset.pattern.permute.xlu2 %v197_v1 }
  0x8b   :  { %894 = vset.pattern.permute.xlu1 %v204_v2  ;;  %419 = vperm.xlu2 %895, %v414_v17  }
  0x8d   :  { %v324_v18 = vpop.permute.xlu2 %323 }
  0x8e   :  { %v348_v35 = vmul.f32 %v1272_v26, %v324_v18 }
  0x90   :  { %v370_v46 = vsel %vm255_vm0, %v348_v35, 0.0 }
  0x93   :  { %412 = vperm.xlu1 %894, %v401_v13   ;;  %432 = vperm.xlu2 %895, %v427_v14  }
  0x9b   :  { %425 = vperm.xlu1 %894, %v414_v17  }
  0x9d   :  { %v330_v27 = vpop.permute.xlu2 %329 }
  0x9e   :  { %v349_v36 = vmul.f32 %v1274_v28, %v330_v27 }
  0xa0   :  { %v371_v47 = vsel %vm255_vm0, %v349_v36, 0.0 }
  0xa1   :  { %v372_v50 = vadd.f32 %v371_v47, %v370_v46  ;;  %v491_v46 = vld [vmem:[#allocation10 + $0x28] sm:$0xff] }
  0xa2   :  { %596 = vmatpush.msrb.mxu3 %v491_v46 }
  0xa3   :  { %v373_v56 = vrot.slane %v372_v50, 4 }
  0xa5   :  { %v311_v20 = vpop.permute.xlu1 %310  ;;  %v343_v49 = vpop.permute.xlu2 %342  ;;  %v374_v1 = vadd.f32 %v373_v56, %v372_v50 }
  0xa6   :  { %v346_v34 = vmul.f32 %v1270_v23, %v311_v20  ;;  %v351_v2 = vmul.f32 %v1294_v58, %v343_v49  ;;  %v489_v49 = vld [vmem:[#allocation10 + $0x18] sm:$0xff] }
  0xa7   :  { %v304_v19 = vpop.permute.xlu0 %303  ;;  %v375_v8 = vrot.slane %v374_v1, 2  ;;  %597 = vmatpush.msrb.mxu3 %v489_v49 }
  0xa8   :  { %v361_v43 = vsel %vm255_vm0, %v346_v34, 0.0  ;;  %v345_v51 = vmul.f32 %v1285_v44, %v304_v19  ;;  %v380_v9 = vsel %vm255_vm0, %v351_v2, 0.0 }
  0xa9   :  { %v376_v17 = vadd.f32 %v375_v8, %v374_v1  ;;  %v684_v8 = vld [vmem:[#allocation14 + $0xb0] sm:$0xff] }
  0xaa   :  { %v353_v57 = vsel %vm255_vm0, %v345_v51, 0.0 }
  0xab   :  { %v377_v24 = vrot.slane %v376_v17, 1 }
  0xad   :  { %v378_v33 = vadd.f32 %v377_v24, %v376_v17  ;;  %v681_v17 = vld [vmem:[#allocation14 + $0x98] sm:$0xff] }
  0xaf   :  { %v1281_v39 = vpop.permute.xlu0 %232 }
  0xb0   :  { %v252_v50 = vadd.f32 %v1274_v28, %v1281_v39 }
  0xb5   :  { %v317_v38 = vpop.permute.xlu1 %316  ;;  %v214_v61 = vpop.permute.xlu2 %213 }
  0xb6   :  { %v347_v40 = vmul.f32 %v1276_v31, %v317_v38  ;;  %v249_v47 = vadd.f32 %v1270_v23, %v214_v61 }
  0xb8   :  { %v362_v45 = vsel %vm255_vm0, %v347_v40, 0.0  ;;  %v492_v40 = vld [vmem:[#allocation10 + $0x30] sm:$0xff]  ;;  %v265_v39 = vsel %vm255_vm0, %v249_v47, -inf }
  0xb9   :  { %v363_v48 = vadd.f32 %v362_v45, %v361_v43  ;;  %575 = vmatpush.msrb.mxu2 %v492_v40  ;;  %v490_v45 = vld [vmem:[#allocation10 + $0x20] sm:$0xff]  ;;  %v672_v47 = vld [vmem:[#allocation14 + $0x50] sm:$0xff] }
  0xbb   :  { %v364_v53 = vrot.slane %v363_v48, 4  ;;  %576 = vmatpush.msrb.mxu2 %v490_v45 }
  0xbd   :  { %v365_v60 = vadd.f32 %v364_v53, %v363_v48  ;;  %v227_v16 = vpop.permute.xlu2 %226  ;;  %v488_v48 = vld [vmem:[#allocation10 + $0x10] sm:$0xff] }
  0xbe   :  { %v251_v51 = vadd.f32 %v1272_v26, %v227_v16  ;;  %577 = vmatpush.msrb.mxu2 %v488_v48  ;;  %v680_v16 = vld [vmem:[#allocation14 + $0x90] sm:$0xff] }
  0xbf   :  { %v298_v55 = vpop.permute.xlu0 %297  ;;  %v366_v3 = vrot.slane %v365_v60, 2 }
  0xc0   :  { %v344_v59 = vmul.f32 %v1291_v52, %v298_v55  ;;  %v274_v1 = vsel %vm255_vm0, %v251_v51, -inf  ;;  %v671_v51 = vld [vmem:[#allocation14 + $0x48] sm:$0xff] }
  0xc1   :  { %v367_v11 = vadd.f32 %v366_v3, %v365_v60  ;;  %v487_v60 = vld [vmem:[#allocation10 + $0x8] sm:$0xff] }
  0xc2   :  { %v352_v62 = vsel %vm255_vm0, %v344_v59, 0.0  ;;  %v486_v59 = vld [vmem:[#allocation10] sm:$0xff]  ;;  %598 = vmatpush.msrb.mxu3 %v487_v60  ;;  %v668_v60 = vld [vmem:[#allocation14 + $0x30] sm:$0xff] }
  0xc3   :  { %v354_v0 = vadd.f32 %v353_v57, %v352_v62  ;;  %v368_v18 = vrot.slane %v367_v11, 1  ;;  %578 = vmatpush.msrb.mxu2 %v486_v59 }
  0xc5   :  { %v355_v4 = vrot.slane %v354_v0, 4  ;;  %v337_v5 = vpop.permute.xlu1 %336  ;;  %v369_v25 = vadd.f32 %v368_v18, %v367_v11 }
  0xc6   :  { %v350_v6 = vmul.f32 %v1298_v63, %v337_v5 }
  0xc7   :  { %v356_v7 = vadd.f32 %v355_v4, %v354_v0  ;;  %v201_v37 = vpop.permute.xlu0 %200  ;;  %v275_v0 = vsel %vm255_vm0, %v252_v50, -inf  ;;  %v670_v50 = vld [vmem:[#allocation14 + $0x40] sm:$0xff] }
  0xc8   :  { %v379_v10 = vsel %vm255_vm0, %v350_v6, 0.0  ;;  %v247_v42 = vadd.f32 %v1291_v52, %v201_v37  ;;  %v276_v5 = vmax.f32 %v274_v1, %v275_v0  ;;  %v674_v37 = vld [vmem:[#allocation14 + $0x60] sm:$0xff] }
  0xc9   :  { %v357_v12 = vrot.slane %v356_v7, 2  ;;  %v381_v13 = vadd.f32 %v380_v9, %v379_v10  ;;  %v685_v9 = vld [vmem:[#allocation14 + $0xb8] sm:$0xff] }
  0xca   :  { %v256_v55 = vsel %vm255_vm0, %v247_v42, -inf }
  0xcb   :  { %v358_v14 = vadd.f32 %v357_v12, %v356_v7  ;;  %v382_v15 = vrot.slane %v381_v13, 4  ;;  %v682_v12 = vld [vmem:[#allocation14 + $0xa0] sm:$0xff] }
  0xcd   :  { %v359_v19 = vrot.slane %v358_v14, 1  ;;  %v383_v20 = vadd.f32 %v382_v15, %v381_v13  ;;  %v246_v32 = vpop.permute.xlu2 %245  ;;  %v683_v13 = vld [vmem:[#allocation14 + $0xa8] sm:$0xff] }
  0xce   :  { %v254_v18 = vadd.f32 %v1294_v58, %v246_v32 }
  0xcf   :  { %v360_v21 = vadd.f32 %v359_v19, %v358_v14  ;;  %v384_v22 = vrot.slane %v383_v20, 2  ;;  %v1320_v61 = vpop.permute.xlu0 %406  ;;  %v277_v14 = vrot.slane %v276_v5, 4 }
  0xd1   :  { %v385_v27 = vadd.f32 %v384_v22, %v383_v20  ;;  %v507_v30 = vsel %vm506_vm1, %v369_v25, %v360_v21  ;;  %v678_v21 = vld [vmem:[#allocation14 + $0x80] sm:$0xff]  ;;  %v679_v22 = vld [vmem:[#allocation14 + $0x88] sm:$0xff]  ;;  %v278_v24 = vmax.f32 %v276_v5, %v277_v14 }
  0xd2   :  { %v509_v36 = vsel %vm508_vm2, %v378_v33, %v507_v30  ;;  %v676_v30 = vld [vmem:[#allocation14 + $0x70] sm:$0xff]  ;;  %v677_v33 = vld [vmem:[#allocation14 + $0x78] sm:$0xff]  ;;  %v607_v14 = vld [vmem:[#allocation13 + $0x20] sm:$0xff] }
  0xd3   :  { %v386_v29 = vrot.slane %v385_v27, 1  ;;  %v279_v40 = vrot.slane %v278_v24, 2 }
  0xd5   :  { %v207_v34 = vpop.permute.xlu1 %206  ;;  %v387_v35 = vadd.f32 %v386_v29, %v385_v27  ;;  %v1315_v54 = vpop.permute.xlu2 %399 }
  0xd6   :  { %v248_v43 = vadd.f32 %v1285_v44, %v207_v34  ;;  %v284_v34 = vsel %vm255_vm0, %v254_v18, -inf  ;;  %v663_v18 = vld [vmem:[#allocation14 + $0x8] sm:$0xff] }
  0xd7   :  { %v511_v38 = vsel %vm510_vm3, %v387_v35, %v509_v36 }
  0xd8   :  { %840 = vmatmul.msk.f32.vlgmr.msra.gmra.mxu2 %vm255_vm0, %v511_v38  ;;  %841 = vmatmul.msk.f32.vlgmr.msra.gmra.mxu3 %vm255_vm0, %v511_v38  ;;  %v257_v56 = vsel %vm255_vm0, %v248_v43, -inf  ;;  %v675_v38 = vld [vmem:[#allocation14 + $0x68] sm:$0xff] }
  0xd9   :  { %v258_v2 = vmax.f32 %v256_v55, %v257_v56  ;;  %694 = vmatpush.msra.mxu2 %v684_v8  ;;  %714 = vmatpush.msra.mxu3 %v685_v9  ;;  %v441_v55 = vmul.f32 %v1285_v44, %v1315_v54  ;;  %v609_v9 = vld [vmem:[#allocation13 + $0x30] sm:$0xff] }
  0xda   :  { %632 = vmatpush.msra.mxu0 %v609_v9  ;;  %v771_v9 = vld [vmem:[#allocation16 + $0xe8] sm:$0xff] }
  0xdb   :  { %v259_v6 = vrot.slane %v258_v2, 4  ;;  %695 = vmatpush.msra.mxu2 %v682_v12  ;;  %715 = vmatpush.msra.mxu3 %v683_v13  ;;  %v449_v5 = vsel %vm255_vm0, %v441_v55, 0.0 }
  0xdc   :  { %633 = vmatpush.msra.mxu0 %v607_v14  ;;  %v768_v14 = vld [vmem:[#allocation16 + $0xd0] sm:$0xff] }
  0xdd   :  { %v220_v53 = vpop.permute.xlu1 %219  ;;  %v260_v15 = vmax.f32 %v258_v2, %v259_v6  ;;  %696 = vmatpush.msra.mxu2 %v680_v16  ;;  %716 = vmatpush.msra.mxu3 %v681_v17  ;;  %v666_v2 = vld [vmem:[#allocation14 + $0x20] sm:$0xff] }
  0xde   :  { %v250_v57 = vadd.f32 %v1276_v31, %v220_v53  ;;  %v280_v53 = vmax.f32 %v278_v24, %v279_v40  ;;  %v662_v16 = vld [vmem:[#allocation14] sm:$0xff] }
  0xdf   :  { %v439_v11 = vpop.permute.xlu0 %438  ;;  %697 = vmatpush.msra.mxu2 %v678_v21  ;;  %717 = vmatpush.msra.mxu3 %v679_v22  ;;  %v261_v25 = vrot.slane %v260_v15, 2  ;;  %v603_v24 = vld [vmem:[#allocation13] sm:$0xff] }
  0xe0   :  { %v266_v62 = vsel %vm255_vm0, %v250_v57, -inf  ;;  %v447_v19 = vmul.f32 %v1294_v58, %v439_v11  ;;  %v664_v11 = vld [vmem:[#allocation14 + $0x10] sm:$0xff] }
  0xe1   :  { %v267_v3 = vmax.f32 %v265_v39, %v266_v62  ;;  %698 = vmatpush.msra.mxu2 %v676_v30  ;;  %718 = vmatpush.msra.mxu3 %v677_v33  ;;  %v262_v43 = vmax.f32 %v260_v15, %v261_v25  ;;  %v669_v39 = vld [vmem:[#allocation14 + $0x38] sm:$0xff]  ;;  %v608_v15 = vld [vmem:[#allocation13 + $0x28] sm:$0xff]  ;;  %v484_v30 = vld [vmem:[%s1381_s4] sm:$0x3]  ;;  %v442_v33 = vmul.f32 %v1270_v23, %v1320_v61 }
  0xe2   :  { %v476_v58 = vsel %vm255_vm0, %v447_v19, 0.0  ;;  %v605_v19 = vld [vmem:[#allocation13 + $0x10] sm:$0xff]  ;;  %v604_v25 = vld [vmem:[#allocation13 + $0x8] sm:$0xff] }
  0xe3   :  { %v268_v4 = vrot.slane %v267_v3, 4  ;;  %699 = vmatpush.msra.mxu2 %v674_v37  ;;  %719 = vmatpush.msra.mxu3 %v675_v38  ;;  %v263_v56 = vrot.slane %v262_v43, 1 }
  0xe4   :  { %634 = vmatpush.msra.mxu0 %v605_v19  ;;  %v749_v19 = vld [vmem:[#allocation16 + $0x38] sm:$0xff] }
  0xe5   :  { %v1326_v7 = vpop.permute.xlu2 %419  ;;  %v269_v10 = vmax.f32 %v267_v3, %v268_v4  ;;  %700 = vmatpush.msra.mxu2 %v672_v47  ;;  %v667_v3 = vld [vmem:[#allocation14 + $0x28] sm:$0xff]  ;;  %v281_v4 = vrot.slane %v280_v53, 1  ;;  %v264_v54 = vmax.f32 %v262_v43, %v263_v56 }
  0xe6   :  { %635 = vmatpush.msra.mxu0 %v603_v24  ;;  %v444_v23 = vmul.f32 %v1272_v26, %v1326_v7  ;;  %v747_v24 = vld [vmem:[#allocation16 + $0x28] sm:$0xff] }
  0xe7   :  { %v270_v20 = vrot.slane %v269_v10, 2  ;;  %701 = vmatpush.msra.mxu2 %v670_v50  ;;  %v282_v17 = vmax.f32 %v280_v53, %v281_v4 }
  0xe9   :  { %v271_v36 = vmax.f32 %v269_v10, %v270_v20  ;;  %702 = vmatpush.msra.mxu2 %v668_v60  ;;  %v610_v10 = vld [vmem:[#allocation13 + $0x38] sm:$0xff] }
  0xea   :  { %652 = vmatpush.msra.mxu1 %v610_v10  ;;  %v606_v20 = vld [vmem:[#allocation13 + $0x18] sm:$0xff]  ;;  %v754_v10 = vld [vmem:[#allocation16 + $0x60] sm:$0xff] }
  0xeb   :  { %v272_v48 = vrot.slane %v271_v36, 1  ;;  %703 = vmatpush.msra.mxu2 %v666_v2 }
  0xec   :  { %653 = vmatpush.msra.mxu1 %v608_v15  ;;  %v751_v15 = vld [vmem:[#allocation16 + $0x48] sm:$0xff] }
  0xed   :  { %v240_v27 = vpop.permute.xlu1 %239  ;;  %v433_v29 = vpop.permute.xlu2 %432  ;;  %v273_v0 = vmax.f32 %v271_v36, %v272_v48  ;;  %704 = vmatpush.msra.mxu2 %v664_v11  ;;  %v457_v36 = vsel %vm255_vm0, %v442_v33, 0.0  ;;  %v466_v48 = vsel %vm255_vm0, %v444_v23, 0.0  ;;  %v770_v11 = vld [vmem:[#allocation16 + $0xe0] sm:$0xff]  ;;  %v761_v33 = vld [vmem:[#allocation16 + $0x98] sm:$0xff]  ;;  %v732_v23 = vld [vmem:[%s1386_s9] sm:$0x3] }
  0xee   :  { %v253_v35 = vadd.f32 %v1298_v63, %v240_v27  ;;  %v446_v32 = vmul.f32 %v1298_v63, %v433_v29  ;;  %v673_v63 = vld [vmem:[#allocation14 + $0x58] sm:$0xff]  ;;  %654 = vmatpush.msra.mxu1 %v606_v20 }
  0xef   :  { %720 = vmatpush.msra.mxu3 %v673_v63  ;;  %v558_v13 = vsel %vm506_vm1, %v273_v0, %v264_v54  ;;  %705 = vmatpush.msra.mxu2 %v662_v16  ;;  %v756_v54 = vld [vmem:[#allocation16 + $0x70] sm:$0xff]  ;;  %v767_v16 = vld [vmem:[#allocation16 + $0xc8] sm:$0xff]  ;;  %v765_v20 = vld [vmem:[#allocation16 + $0xb8] sm:$0xff] }
  0xf0   :  { %v283_v41 = vsel %vm255_vm0, %v253_v35, -inf  ;;  %v475_v42 = vsel %vm255_vm0, %v446_v32, 0.0  ;;  %v559_v22 = vsel %vm508_vm2, %v282_v17, %v558_v13  ;;  %655 = vmatpush.msra.mxu1 %v604_v25  ;;  %v752_v13 = vld [vmem:[#allocation16 + $0x50] sm:$0xff]  ;;  %v750_v17 = vld [vmem:[#allocation16 + $0x40] sm:$0xff]  ;;  %v763_v25 = vld [vmem:[#allocation16 + $0xa8] sm:$0xff] }
  0xf1   :  { %v285_v45 = vmax.f32 %v283_v41, %v284_v34  ;;  %v1336_v46 = vadd.f32 %v476_v58, %v475_v42  ;;  %721 = vmatpush.msra.mxu3 %v671_v51  ;;  %v485_v34 = vunpack.c.l.bf16 %v484_v30  ;;  %v745_v30 = vld [vmem:[#allocation16 + $0x18] sm:$0xff] }
  0xf3   :  { %v286_v49 = vrot.slane %v285_v45, 4  ;;  %722 = vmatpush.msra.mxu3 %v669_v39  ;;  %v478_v41 = vrot.slane %v1336_v46, 4 }
  0xf5   :  { %v287_v57 = vmax.f32 %v285_v45, %v286_v49  ;;  %v394_v59 = vpop.permute.xlu1 %393  ;;  %723 = vmatpush.msra.mxu3 %v667_v3  ;;  %v479_v47 = vadd.f32 %v478_v41, %v1336_v46 }
  0xf6   :  { %v440_v62 = vmul.f32 %v1291_v52, %v394_v59  ;;  %v665_v52 = vld [vmem:[#allocation14 + $0x18] sm:$0xff] }
  0xf7   :  { %v288_v1 = vrot.slane %v287_v57, 2  ;;  %724 = vmatpush.msra.mxu3 %v665_v52  ;;  %v480_v55 = vrot.slane %v479_v47, 2  ;;  %v753_v52 = vld [vmem:[#allocation16 + $0x58] sm:$0xff] }
  0xf8   :  { %v448_v44 = vsel %vm255_vm0, %v440_v62, 0.0 }
  0xf9   :  { %v289_v6 = vmax.f32 %v287_v57, %v288_v1  ;;  %v450_v8 = vadd.f32 %v449_v5, %v448_v44  ;;  %725 = vmatpush.msra.mxu3 %v663_v18  ;;  %v481_v60 = vadd.f32 %v480_v55, %v479_v47  ;;  %v757_v5 = vld [vmem:[#allocation16 + $0x78] sm:$0xff]  ;;  %v766_v18 = vld [vmem:[#allocation16 + $0xc0] sm:$0xff] }
  0xfa   :  { %v773_v44 = vld [vmem:[#allocation16 + $0xf8] sm:$0xff]  ;;  %778 = vmatpush.msrb.mxu0 %v757_v5 }
  0xfb   :  { %v290_v12 = vrot.slane %v289_v6, 1  ;;  %v451_v29 = vrot.slane %v450_v8, 4  ;;  %798 = vmatpush.msrb.mxu1 %v773_v44 }
  0xfc   :  { %779 = vmatpush.msrb.mxu0 %v756_v54 }
  0xfd   :  { %v291_v21 = vmax.f32 %v289_v6, %v290_v12  ;;  %v452_v35 = vadd.f32 %v451_v29, %v450_v8  ;;  %v772_v6 = vld [vmem:[#allocation16 + $0xf0] sm:$0xff]  ;;  %v755_v8 = vld [vmem:[#allocation16 + $0x68] sm:$0xff]  ;;  %v769_v12 = vld [vmem:[#allocation16 + $0xd8] sm:$0xff] }
  0xfe   :  { %799 = vmatpush.msrb.mxu1 %v772_v6  ;;  %780 = vmatpush.msrb.mxu0 %v755_v8  ;;  %v762_v29 = vld [vmem:[#allocation16 + $0xa0] sm:$0xff] }
  0xff   :  { %v560_v27 = vsel %vm510_vm3, %v291_v21, %v559_v22  ;;  %v453_v38 = vrot.slane %v452_v35, 2  ;;  %v748_v21 = vld [vmem:[#allocation16 + $0x30] sm:$0xff] }
 0x100   :  { %842 = vmatmul.msk.f32.vlgmr.msrb.gmra.mxu2 %vm255_vm0, %v560_v27  ;;  %843 = vmatmul.msk.f32.vlgmr.msrb.gmra.mxu3 %vm255_vm0, %v560_v27  ;;  %v764_v22 = vld [vmem:[#allocation16 + $0xb0] sm:$0xff]  ;;  %v746_v27 = vld [vmem:[#allocation16 + $0x20] sm:$0xff] }
 0x101   :  { %v454_v61 = vadd.f32 %v453_v38, %v452_v35  ;;  %800 = vmatpush.msrb.mxu1 %v771_v9  ;;  %781 = vmatpush.msrb.mxu0 %v754_v10  ;;  %v760_v35 = vld [vmem:[#allocation16 + $0x90] sm:$0xff] }
 0x103   :  { %v455_v50 = vrot.slane %v454_v61, 1  ;;  %801 = vmatpush.msrb.mxu1 %v770_v11  ;;  %782 = vmatpush.msrb.mxu0 %v753_v52 }
 0x105   :  { %v413_v32 = vpop.permute.xlu1 %412  ;;  %v456_v59 = vadd.f32 %v455_v50, %v454_v61  ;;  %802 = vmatpush.msrb.mxu1 %v769_v12  ;;  %783 = vmatpush.msrb.mxu0 %v752_v13  ;;  %v734_v50 = vperm.slane %v732_v23, 0 }
 0x106   :  { %v443_v58 = vmul.f32 %v1276_v31, %v413_v32  ;;  %v743_v32 = vld [vmem:[#allocation16 + $0x8] sm:$0xff] }
 0x107   :  { %803 = vmatpush.msrb.mxu1 %v768_v14  ;;  %784 = vmatpush.msrb.mxu0 %v751_v15 }
 0x108   :  { %v458_v37 = vsel %vm255_vm0, %v443_v58, 0.0  ;;  %846 = vmatmul.msk.f32.vlgmr.msra.gmra.mxu2 %vm686_vm4, %v485_v34  ;;  %847 = vmatmul.msk.f32.vlgmr.msra.gmra.mxu3 %vm686_vm4, %v485_v34  ;;  %v744_v34 = vld [vmem:[#allocation16 + $0x10] sm:$0xff]  ;;  %v759_v58 = vld [vmem:[#allocation16 + $0x88] sm:$0xff] }
 0x109   :  { %v459_v40 = vadd.f32 %v458_v37, %v457_v36  ;;  %804 = vmatpush.msrb.mxu1 %v767_v16  ;;  %785 = vmatpush.msrb.mxu0 %v750_v17  ;;  %v742_v36 = vld [vmem:[#allocation16] sm:$0xff] }
 0x10a   :  { %v758_v37 = vld [vmem:[#allocation16 + $0x80] sm:$0xff] }
 0x10b   :  { %v460_v42 = vrot.slane %v459_v40, 4  ;;  %805 = vmatpush.msrb.mxu1 %v766_v18  ;;  %786 = vmatpush.msrb.mxu0 %v749_v19 }
 0x10d   :  { %v461_v43 = vadd.f32 %v460_v42, %v459_v40  ;;  %v426_v45 = vpop.permute.xlu1 %425  ;;  %806 = vmatpush.msrb.mxu1 %v765_v20  ;;  %787 = vmatpush.msrb.mxu0 %v748_v21 }
 0x10e   :  { %v445_v31 = vmul.f32 %v1274_v28, %v426_v45  ;;  %v482_v28 = vrot.slane %v481_v60, 1 }
 0x10f   :  { %v462_v63 = vrot.slane %v461_v43, 2  ;;  %807 = vmatpush.msrb.mxu1 %v764_v22  ;;  %788 = vmatpush.msrb.mxu0 %v747_v24 }
 0x110   :  { %v467_v49 = vsel %vm255_vm0, %v445_v31, 0.0  ;;  %v483_v2 = vadd.f32 %v482_v28, %v481_v60 }
 0x111   :  { %v463_v51 = vadd.f32 %v462_v63, %v461_v43  ;;  %v468_v53 = vadd.f32 %v467_v49, %v466_v48  ;;  %808 = vmatpush.msrb.mxu1 %v763_v25  ;;  %789 = vmatpush.msrb.mxu0 %v746_v27 }
 0x113   :  { %v464_v56 = vrot.slane %v463_v51, 1  ;;  %v469_v57 = vrot.slane %v468_v53, 4  ;;  %809 = vmatpush.msrb.mxu1 %v762_v29  ;;  %790 = vmatpush.msrb.mxu0 %v745_v30 }
 0x115   :  { %v465_v26 = vadd.f32 %v464_v56, %v463_v51  ;;  %v470_v7 = vadd.f32 %v469_v57, %v468_v53  ;;  %810 = vmatpush.msrb.mxu1 %v761_v33  ;;  %791 = vmatpush.msrb.mxu0 %v744_v34  ;;  %v735_v51 = vperm.slane %v732_v23, 1 }
 0x117   :  { %v471_v39 = vrot.slane %v470_v7, 2  ;;  %v615_v46 = vsel %vm506_vm1, %v465_v26, %v456_v59  ;;  %811 = vmatpush.msrb.mxu1 %v760_v35  ;;  %792 = vmatpush.msrb.mxu0 %v743_v32 }
 0x119   :  { %v472_v62 = vadd.f32 %v471_v39, %v470_v7  ;;  %812 = vmatpush.msrb.mxu1 %v759_v58  ;;  %793 = vmatpush.msrb.mxu0 %v742_v36  ;;  %v897_v7 = vld [vmem:[%s1388_s11] ss:$0 sm:$0xff] }
 0x11b   :  { %v473_v0 = vrot.slane %v472_v62, 1  ;;  %813 = vmatpush.msrb.mxu1 %v758_v37 }
 0x11d   :  { %v474_v1 = vadd.f32 %v473_v0, %v472_v62 }
 0x11f   :  { %v616_v3 = vsel %vm508_vm2, %v474_v1, %v615_v46 }
 0x120   :  { %v617_v4 = vsel %vm510_vm3, %v483_v2, %v616_v3 }
 0x121   :  { %844 = vmatmul.msk.f32.vlgmr.msra.gmra.mxu0 %vm255_vm0, %v617_v4  ;;  %845 = vmatmul.msk.f32.vlgmr.msra.gmra.mxu1 %vm255_vm0, %v617_v4 }
 0x15b   :  { %v531_v38 = vpop.f32.mrf.mxu2  ;;  %v551_v40 = vpop.f32.mrf.mxu3 }
 0x183   :  { %v580_v41 = vpop.f32.mrf.mxu2  ;;  %v600_v42 = vpop.f32.mrf.mxu3 }
 0x184   :  { %v581_v61 = vadd.f32 %v580_v41, %v531_v38  ;;  %v601_v43 = vadd.f32 %v600_v42, %v551_v40 }
 0x18b   :  { %v707_v45 = vpop.f32.mrf.mxu2  ;;  %v727_v47 = vpop.f32.mrf.mxu3 }
 0x19e   :  { %v637_v31 = vpop.f32.mrf.mxu0  ;;  %v657_v63 = vpop.f32.mrf.mxu1 }
 0x19f   :  { %v660_v48 = vadd.f32 %v637_v31, %v581_v61  ;;  %v661_v49 = vadd.f32 %v657_v63, %v601_v43 }
 0x1a1   :  { %v730_v53 = vadd.f32 %v707_v45, %v660_v48  ;;  %v731_v55 = vadd.f32 %v727_v47, %v661_v49 }
 0x1a3   :  { %v738_v56 = vadd.f32 %v734_v50, %v730_v53  ;;  %v739_v57 = vadd.f32 %v735_v51, %v731_v55 }
 0x1a5   :  { %v740_v59 = vmax.f32 %v738_v56, 0.0  ;;  %v741_v26 = vmax.f32 %v739_v57, 0.0 }
 0x1a7   :  { %794 = vmatmul.f32.vlgmr.msrb.gmra.mxu0 %v740_v59  ;;  %814 = vmatmul.f32.vlgmr.msrb.gmra.mxu1 %v741_v26 }
 0x224   :  { %v795_v60 = vpop.f32.mrf.mxu0  ;;  %v815_v46 = vpop.f32.mrf.mxu1 }
 0x225   :  { %v796_v39 = vadd.f32 %v897_v7, %v795_v60 }
 0x227   :  { %v816_v62 = vadd.f32 %v815_v46, %v796_v39 }
 0x229   :  { %818 = vst [vmem:[#allocation17] sm:$0xf] %v816_v62 }
 0x22a   :  { %829 = dma.vmem_to_hbm [thread:$0]  %s825_s28, 64, %s827_s13, [#allocation4]  }
 0x22b   :  { %1148 = dma.done.wait [#allocation4], 64  }
 0x22c   :  { %1149 = vsyncadd [#allocation4], 4294967232 }
 0x22d   :  { %834 = vsyncpa [#allocation3], 1 }
 0x22e   :  { %835 = vsyncpa [#allocation6], 1 }
 0x22f   :  { %836 = vsyncpa [#allocation9], 1 }
 0x230   :  { %837 = vsyncpa [#allocation12], 1 }
 0x231   :  { %838 = vsyncpa [#allocation15], 1 }
 0x232   :  { %839 = vsyncpa [#allocation4], 1 }

</bundles_post_ra>
